<compile_context>
chip_gen: v7x
topology: tpu7x:2x2x1
jax: 0.10.0
libtpu: 0.0.40
codegen_flags: <defaults>
</compile_context>

<pallas_src>
import math
import functools

import numpy as np
import jax
import jax.numpy as jnp
from jax.experimental import pallas as pl
from jax.experimental.pallas import tpu as pltpu

# ---------------- config (small shapes consistent with SHNMN.__init__) -------
C_IN = 3            # feature_dim[0]
H = W = 16          # feature_dim[1], feature_dim[2]
STEM_DIM = 16       # stem_dim
DIM = 8             # module_dim
K = 3               # module_kernel_size (== stem kernel size)
PAD = K // 2
LEN_EMB = 2         # len_embedding (number of attribute families)
PROJ_DIM = 16       # classifier_proj_dim
N_CLASSES = (3, 4)  # classes per attribute classifier
NC_MAX = max(N_CLASSES)
NUM_MODULES = 1     # -> single-module branch of _shnmn_func (alpha/tau unused)

EMB_DIM_1 = DIM + DIM * DIM * K * K     # cnn weight + bias  (stdv_1 init)
EMB_DIM_2 = DIM + 2 * DIM * DIM         # proj weight + bias (stdv_2 init)
EMB_DIM = EMB_DIM_1 + EMB_DIM_2

HW = H * W                              # 256: lane-dense spatial axis per sample
C_PAD1 = 8                              # C_IN zero-padded to a sublane multiple
CWB_W = K * K * LEN_EMB * DIM           # 144: block-diag dynamic conv weight width
PJW_OFF = CWB_W                         # 144: 1x1 proj weight lanes
PJB_OFF = PJW_OFF + DIM                 # 152: 1x1 proj bias lane
CBB_OFF = PJB_OFF + 1                   # 153: dynamic conv bias lane
PACK_W = 256                            # packed per-sample weight lane width
OUT_W = LEN_EMB * NC_MAX                # 8


# ----------------------- pltpu.roll direction probe --------------------------
def _probe_roll_sign():
    # Run once outside jit: returns -1 if pltpu.roll matches jnp.roll
    # (out[i] = in[i - shift]) else +1, so the static im2col shift amounts are
    # correct regardless of the rotate-direction convention of this jax build.
    def k(x_ref, o_ref):
        o_ref[...] = pltpu.roll(x_ref[...], shift=1, axis=1)

    x = jnp.tile(jnp.arange(128, dtype=jnp.float32)[None, :], (8, 1))
    y = pl.pallas_call(k, out_shape=jax.ShapeDtypeStruct((8, 128), jnp.float32))(x)
    return -1 if int(y[0, 0]) == 127 else 1


_ROLL_SIGN = _probe_roll_sign()


# --------------------------- fused forward kernel ----------------------------
# TODO(synk): build_stem / build_classifier are external deps not in the module
# source; implemented as conv3x3+ReLU, conv3x3+ReLU (stem_num_layers=2, no BN)
# and conv1x1+ReLU, global max pool, Linear (no BN) respectively.
def _shnmn_fused_kernel(x_ref, m_ref, w1_ref, b1_ref, w2_ref, b2_ref,
                        clw_ref, clb_ref, fwt_ref, fb_ref, dynw_ref, o_ref):
    f32 = jnp.float32
    bt = o_ref.shape[1]          # samples per grid step
    n = x_ref.shape[1]           # bt * HW lanes (lane-stacked batch tile)
    masks = m_ref[...]           # (K*K, n) 0/1 tap-validity masks

    def im2col(x):
        # x: (c, n) lane-stacked feature maps -> (K*K*c, n) patch matrix, rows
        # ordered (tap, channel).  Shifted taps are register-level lane
        # rotations (XLU); positions whose source pixel lies outside its own
        # image (incl. a neighbouring sample of the tile) are zeroed by masks.
        pieces = []
        for t in range(K * K):
            ky, kx = divmod(t, K)
            d = (ky - PAD) * W + (kx - PAD)
            if d == 0:
                pieces.append(x)
            else:
                shifted = pltpu.roll(x, shift=(_ROLL_SIGN * d) % n, axis=1)
                pieces.append(shifted * masks[t:t + 1, :])
        return jnp.concatenate(pieces, axis=0)

    def conv(x, w, b):
        # one lane-dense MXU matmul per conv layer
        return jnp.dot(w, im2col(x), preferred_element_type=f32) + b

    # ---- shared stem: conv3x3 + ReLU, conv3x3 + ReLU (lane-stacked batch) ----
    s1 = jnp.maximum(conv(x_ref[...], w1_ref[...], b1_ref[...]), 0.0)     # (16, n)
    stemmed = jnp.maximum(conv(s1, w2_ref[...], b2_ref[...]), 0.0)        # (8, n)

    # ---- both ConvFunc modules (per-sample dynamic weights) ------------------
    dyn = [dynw_ref[s] for s in range(bt)]                                # (16, 256)

    # 1x1 projection of [sentinel | stemmed] (zero sentinel half dropped), both
    # modules stacked on the sublane axis; per-sample matmul, static unrolled.
    cnn_inp = jnp.concatenate(
        [jnp.dot(dyn[s][:, PJW_OFF:PJB_OFF], stemmed[:, s * HW:(s + 1) * HW],
                 preferred_element_type=f32) + dyn[s][:, PJB_OFF:CBB_OFF]
         for s in range(bt)], axis=1)                                     # (16, n)

    patches = im2col(cnn_inp)                                             # (144, n)

    # per-sample KxK dynamic conv, block-diagonal over the two modules, + ReLU
    h_all = jnp.concatenate(
        [jnp.maximum(
            jnp.dot(dyn[s][:, :CWB_W], patches[:, s * HW:(s + 1) * HW],
                    preferred_element_type=f32) + dyn[s][:, CBB_OFF:CBB_OFF + 1],
            0.0)
         for s in range(bt)], axis=1)                                     # (16, n)

    # ---- classifiers: block-diag conv1x1 + ReLU (lane-stacked), per-sample
    #      global max pool + padded FC ----
    pr = jnp.maximum(jnp.dot(clw_ref[...], h_all, preferred_element_type=f32)
                     + clb_ref[...], 0.0)                                 # (32, n)
    rows = []
    for s in range(bt):
        pooled = jnp.max(pr[:, s * HW:(s + 1) * HW], axis=1, keepdims=True)   # (32, 1)
        rows.append(jnp.sum(fwt_ref[...] * pooled, axis=0, keepdims=True)
                    + fb_ref[...])                                        # (1, 8)
    o_ref[0] = jnp.concatenate(rows, axis=0)                              # (bt, 8)


def shnmn_forward(params, image, question, block_batch=8):
    """Fused SHNMN soft/conv/num_modules=1 forward.  Returns a list with one
    (B, n_classes_j) logits array per attribute family."""
    f32 = jnp.float32
    B = image.shape[0]
    BT = min(B, block_batch)                       # samples per grid step
    B_pad = ((B + BT - 1) // BT) * BT
    if B_pad != B:
        image = jnp.pad(image, ((0, B_pad - B), (0, 0), (0, 0), (0, 0)))
        question = jnp.pad(question, ((0, B_pad - B), (0, 0)))
    n = BT * HW
    grid_len = B_pad // BT

    # ---- batch-invariant weights, re-laid-out once per call (tiny) ----
    # stem conv weights merged for im2col: columns ordered (tap, c_in); conv1's
    # input channels zero-padded 3 -> 8 so sublane concats stay aligned.
    w1p = jnp.pad(params['stem_w1'].transpose(0, 2, 3, 1),
                  ((0, 0), (0, 0), (0, 0), (0, C_PAD1 - C_IN)))
    w1p = w1p.reshape(STEM_DIM, K * K * C_PAD1)
    b1 = params['stem_b1'].reshape(STEM_DIM, 1)
    w2m = params['stem_w2'].transpose(0, 2, 3, 1).reshape(DIM, K * K * STEM_DIM)
    b2 = params['stem_b2'].reshape(DIM, 1)

    # classifiers: block-diagonal 1x1 proj over both attribute families and FC
    # weights padded to NC_MAX classes.
    clw_bd = jnp.zeros((LEN_EMB * PROJ_DIM, LEN_EMB * DIM), f32)
    clb_bd = jnp.zeros((LEN_EMB * PROJ_DIM, 1), f32)
    fwt_bd = jnp.zeros((LEN_EMB * PROJ_DIM, OUT_W), f32)
    fb_row = jnp.zeros((1, OUT_W), f32)
    for j, nc in enumerate(N_CLASSES):
        cw, cb, fw, fb = params['classifiers'][j]
        clw_bd = clw_bd.at[j * PROJ_DIM:(j + 1) * PROJ_DIM, j * DIM:(j + 1) * DIM].set(cw)
        clb_bd = clb_bd.at[j * PROJ_DIM:(j + 1) * PROJ_DIM, :].set(cb)
        fwt_bd = fwt_bd.at[j * PROJ_DIM:(j + 1) * PROJ_DIM,
                           j * NC_MAX:j * NC_MAX + nc].set(fw.T)
        fb_row = fb_row.at[0, j * NC_MAX:j * NC_MAX + nc].set(fb[:, 0])

    # ---- per-sample dynamic ConvFunc weights (question embedding), packed into
    #      ONE lane-dense (B, 16, 256) array: [cwb | pjw | pjb | cbb | 0-pad] ----
    embedded = jnp.take(params['emb'], question, axis=0)          # (B_pad, L, EMB_DIM)
    cnn_w_dim = DIM * DIM * K * K
    cnn_w = embedded[..., :cnn_w_dim]
    cnn_b = embedded[..., cnn_w_dim:cnn_w_dim + DIM]
    proj_w = embedded[..., cnn_w_dim + DIM:cnn_w_dim + DIM + 2 * DIM * DIM]
    proj_b = embedded[..., cnn_w_dim + DIM + 2 * DIM * DIM:]

    # 1x1 projection: keep only the rhs half (the lhs input is the zero sentinel)
    proj_w = proj_w.reshape(B_pad, LEN_EMB, DIM, 2 * DIM)[..., DIM:]
    pjw = proj_w.reshape(B_pad, LEN_EMB * DIM, DIM)               # (B, 16, 8)
    pjb = proj_b.reshape(B_pad, LEN_EMB * DIM, 1)                 # (B, 16, 1)

    # KxK dynamic conv: merge taps + block-diagonal over the two modules
    cw_ = cnn_w.reshape(B_pad, LEN_EMB, DIM, DIM, K, K)           # (b, j, co, ci, ky, kx)
    cw_ = cw_.transpose(0, 1, 2, 4, 5, 3).reshape(B_pad, LEN_EMB, DIM, K * K, DIM)
    eye = jnp.eye(LEN_EMB, dtype=f32)
    cwb = (cw_[:, :, :, :, None, :] * eye[None, :, None, None, :, None]).reshape(
        B_pad, LEN_EMB * DIM, CWB_W)                              # (B, 16, 144)
    cbb = cnn_b.reshape(B_pad, LEN_EMB * DIM, 1)                  # (B, 16, 1)
    dynw = jnp.concatenate(
        [cwb, pjw, pjb, cbb,
         jnp.zeros((B_pad, LEN_EMB * DIM, PACK_W - CBB_OFF - 1), f32)], axis=-1)

    # ---- image: lane-stacked spatial axis, channels padded 3 -> 8 ----
    x = image.reshape(B_pad, C_IN, HW).transpose(1, 0, 2).reshape(C_IN, B_pad * HW)
    x = jnp.pad(x, ((0, C_PAD1 - C_IN), (0, 0)))

    # ---- per-tap validity masks (batch-invariant, DMA'd once, stays resident) --
    lane = np.arange(n)
    cc = lane % W
    rr = (lane // W) % H
    mlist = []
    for t in range(K * K):
        ky, kx = divmod(t, K)
        dy, dx = ky - PAD, kx - PAD
        mlist.append((cc + dx >= 0) & (cc + dx < W) & (rr + dy >= 0) & (rr + dy < H))
    masks = jnp.asarray(np.stack(mlist).astype(np.float32))       # (9, n)

    out = pl.pallas_call(
        _shnmn_fused_kernel,
        out_shape=jax.ShapeDtypeStruct((grid_len, BT, OUT_W), f32),
        grid=(grid_len,),
        in_specs=[
            pl.BlockSpec((C_PAD1, n), lambda i: (0, i)),                    # image tile
            pl.BlockSpec((K * K, n), lambda i: (0, 0)),                     # tap masks
            pl.BlockSpec((STEM_DIM, K * K * C_PAD1), lambda i: (0, 0)),     # stem conv1 w
            pl.BlockSpec((STEM_DIM, 1), lambda i: (0, 0)),                  # stem conv1 b
            pl.BlockSpec((DIM, K * K * STEM_DIM), lambda i: (0, 0)),        # stem conv2 w
            pl.BlockSpec((DIM, 1), lambda i: (0, 0)),                       # stem conv2 b
            pl.BlockSpec((LEN_EMB * PROJ_DIM, LEN_EMB * DIM), lambda i: (0, 0)),  # cls proj (block-diag)
            pl.BlockSpec((LEN_EMB * PROJ_DIM, 1), lambda i: (0, 0)),        # cls proj bias
            pl.BlockSpec((LEN_EMB * PROJ_DIM, OUT_W), lambda i: (0, 0)),    # cls FC (padded)
            pl.BlockSpec((1, OUT_W), lambda i: (0, 0)),                     # cls FC bias
            pl.BlockSpec((BT, LEN_EMB * DIM, PACK_W), lambda i: (i, 0, 0)), # packed per-sample weights
        ],
        out_specs=pl.BlockSpec((1, BT, OUT_W), lambda i: (i, 0, 0)),
        compiler_params=pltpu.CompilerParams(dimension_semantics=("parallel",)),
    )(x, masks, w1p, b1, w2m, b2, clw_bd, clb_bd, fwt_bd, fb_row, dynw)

    out = out.reshape(B_pad, OUT_W)
    return [out[:B, j * NC_MAX:j * NC_MAX + N_CLASSES[j]] for j in range(LEN_EMB)]


# ------------------------- parameters (as in SHNMN.__init__) ------------------
def init_params(key):
    ks = jax.random.split(key, 10)
    # question_embeddings: cat of uniform(-stdv_1, stdv_1) and uniform(-stdv_2, stdv_2)
    stdv1 = 1.0 / math.sqrt(DIM * K * K)
    stdv2 = 1.0 / math.sqrt(2 * DIM)
    emb1 = jax.random.uniform(ks[0], (LEN_EMB, EMB_DIM_1), jnp.float32, -stdv1, stdv1)
    emb2 = jax.random.uniform(ks[1], (LEN_EMB, EMB_DIM_2), jnp.float32, -stdv2, stdv2)
    emb = jnp.concatenate([emb1, emb2], axis=-1)                    # (LEN_EMB, EMB_DIM)

    def conv_init(k, c_out, c_in):
        fan_in = c_in * K * K
        return jax.random.normal(k, (c_out, c_in, K, K), jnp.float32) * math.sqrt(2.0 / fan_in)

    stem_w1 = conv_init(ks[2], STEM_DIM, C_IN)
    stem_b1 = jnp.zeros((STEM_DIM,), jnp.float32)
    stem_w2 = conv_init(ks[3], DIM, STEM_DIM)
    stem_b2 = jnp.zeros((DIM,), jnp.float32)

    classifiers = []
    for i, nc in enumerate(N_CLASSES):
        kp, kf = jax.random.split(ks[4 + i], 2)
        cw = jax.random.normal(kp, (PROJ_DIM, DIM), jnp.float32) * math.sqrt(2.0 / DIM)
        cb = jnp.zeros((PROJ_DIM, 1), jnp.float32)
        fw = jax.random.normal(kf, (nc, PROJ_DIM), jnp.float32) * math.sqrt(1.0 / PROJ_DIM)
        fb = jnp.zeros((nc, 1), jnp.float32)
        classifiers.append((cw, cb, fw, fb))

    # alpha / tau exist in SHNMN.__init__ but are unused by the num_modules==1
    # branch of _shnmn_func (the `else` branch); kept for fidelity.
    alpha = jax.random.uniform(ks[8], (NUM_MODULES, 3), jnp.float32, -1.0, 1.0)
    tau_0 = jnp.zeros((1, 2), jnp.float32).at[0, 1].set(1.0)        # _single_tau()
    tau_1 = jnp.zeros((1, 2), jnp.float32).at[0, 0].set(1.0)

    return dict(emb=emb, stem_w1=stem_w1, stem_b1=stem_b1, stem_w2=stem_w2,
                stem_b2=stem_b2, classifiers=classifiers,
                alpha=alpha, tau_0=tau_0, tau_1=tau_1)


# ------------------------ pure-JAX reference (checking) -----------------------
def _ref_conv2d(x, w, b, pad):
    # x: (Cin, H, W); w: (Cout, Cin, kh, kw); b: (Cout,)
    hp = jax.lax.Precision.HIGHEST
    kh, kw = w.shape[2], w.shape[3]
    xp = jnp.pad(x, ((0, 0), (pad, pad), (pad, pad)))
    acc = jnp.zeros((w.shape[0], H, W), jnp.float32)
    for ky in range(kh):
        for kx in range(kw):
            acc = acc + jnp.einsum('oi,ihw->ohw', w[:, :, ky, kx],
                                   xp[:, ky:ky + H, kx:kx + W], precision=hp)
    return acc + b[:, None, None]


def shnmn_reference(params, image, question):
    hp = jax.lax.Precision.HIGHEST
    B = image.shape[0]
    embedded = jnp.take(params['emb'], question, axis=0)
    cnn_w_dim = DIM * DIM * K * K
    per_attr = [[] for _ in range(LEN_EMB)]
    for i in range(B):
        s1 = jax.nn.relu(_ref_conv2d(image[i], params['stem_w1'], params['stem_b1'], PAD))
        stemmed = jax.nn.relu(_ref_conv2d(s1, params['stem_w2'], params['stem_b2'], PAD))
        for j in range(LEN_EMB):
            q = embedded[i, j]
            cnn_w = q[:cnn_w_dim].reshape(DIM, DIM, K, K)
            cnn_b = q[cnn_w_dim:cnn_w_dim + DIM]
            pw = q[cnn_w_dim + DIM:cnn_w_dim + DIM + 2 * DIM * DIM].reshape(DIM, 2 * DIM, 1, 1)
            pb = q[cnn_w_dim + DIM + 2 * DIM * DIM:]
            inp = jnp.concatenate([jnp.zeros_like(stemmed), stemmed], axis=0)
            cnn_inp = _ref_conv2d(inp, pw, pb, 0)
            h = jax.nn.relu(_ref_conv2d(cnn_inp, cnn_w, cnn_b, PAD))
            cw, cb, fw, fb = params['classifiers'][j]
            pr = jax.nn.relu(jnp.einsum('pd,dhw->phw', cw, h, precision=hp) + cb[:, :, None])
            pooled = jnp.max(pr.reshape(PROJ_DIM, -1), axis=1)
            per_attr[j].append(jnp.dot(fw, pooled, precision=hp) + fb[:, 0])
    return [jnp.stack(o) for o in per_attr]


if __name__ == "__main__":
    key = jax.random.PRNGKey(0)
    kimg, kq, kparam = jax.random.split(key, 3)
    B = 4
    image = jax.random.normal(kimg, (B, C_IN, H, W), jnp.float32)
    question = jax.random.randint(kq, (B, LEN_EMB), 0, LEN_EMB)
    params = init_params(kparam)

    # 2 samples per grid step -> a 2-step "parallel" grid (exercises batch tiling)
    fwd = jax.jit(functools.partial(shnmn_forward, block_batch=2))
    outs = fwd(params, image, question)
    outs = [jax.block_until_ready(o) for o in outs]
    assert outs[0].shape == (B, N_CLASSES[0]) and outs[1].shape == (B, N_CLASSES[1])
    assert all(bool(jnp.all(jnp.isfinite(o))) for o in outs)

    refs = shnmn_reference(params, image, question)
    for o, r in zip(outs, refs):
        assert bool(jnp.allclose(o, r, rtol=1e-3, atol=1e-3))

    print("KERNEL_OK")
</pallas_src>

<mosaic_0001>
module attributes {stable_mosaic.version = 11 : i64} {
  func.func @k(%arg0: memref<8x128xf32, #tpu.memory_space<vmem>>, %arg1: memref<8x128xf32, #tpu.memory_space<vmem>>) attributes {dimension_semantics = [], scalar_prefetch = 0 : i64, scratch_operands = 0 : i64, tpu.core_type = #tpu.core_type<tc>} {
    %c0 = arith.constant 0 : index
    %c0_0 = arith.constant 0 : index
    %0 = vector.load %arg0[%c0, %c0_0] : memref<8x128xf32, #tpu.memory_space<vmem>>, vector<8x128xf32>
    %c1_i32 = arith.constant 1 : i32
    %1 = tpu.dynamic_rotate %0 by %c1_i32 dim 1 : vector<8x128xf32>, i32 -> vector<8x128xf32>
    %c0_1 = arith.constant 0 : index
    %c0_2 = arith.constant 0 : index
    %2 = vector.load %arg1[%c0_1, %c0_2] : memref<8x128xf32, #tpu.memory_space<vmem>>, vector<8x128xf32>
    tpu.vector_store %arg1[%c0_1, %c0_2], %1 {strides = array<i32>} : memref<8x128xf32, #tpu.memory_space<vmem>>, vector<8x128xf32>,
    return
  }
}

</mosaic_0001>

<bundles_post_ra>
// kernel: tpu_custom_call.1
= control target key start
LH: loop header
LB: loop body
LE: loop exit
PB: predicated region body
PF: predicated region fallthrough
CT: control target
= control target key end

     0   :  { %6 = vsyncpa [#allocation3], 0  ;;  %s128_s0 = inlined_call_operand.hbm [shape: f32[8,128], index: 0, kind: input, shape index: {}]   ;;  %s129_s1 = inlined_call_operand.hbm [shape: f32[8,128], index: 1, kind: output, shape index: {}]  }
   0x1   :  { %7 = vsyncpa [#allocation4], 0  ;;  %s91_s6 = smov [#allocation2]   ;;  %s43_s10 = scalar_lea.hbm %s128_s0, 128 }
   0x2   :  { %s14_s7 = sshll.u32 %s91_s6, 4  ;;  %p44_p0 = scmp.ne.s32.totalorder %s128_s0, %s43_s10  ;;  %s15_s7 = int_to_ptr.vmem [resolvable:$true] %s14_s7 }
   0x3   :  { %p47_p1 = scmp.lt.u32.totalorder %s43_s10, %s128_s0 }
   0x5   :  { %p49_p2 = pnand %p47_p1, %p44_p0 }
   0x7   :  { %52 = shalt.err (!%p49_p2)
}
   0x8   :  { %s53_s15 = scalar_lea.vmem %s15_s7, 128  ;;  %p58_p4 = scmp.lt.s32.totalorder %s15_s7, %s15_s7 }
   0x9   :  { %p54_p3 = scmp.ne.s32.totalorder %s15_s7, %s53_s15  ;;  %p59_p5 = scmp.lt.s32.totalorder %s53_s15, %s53_s15 }
   0xb   :  { %p60_p6 = por %p59_p5, %p58_p4 }
   0xd   :  { %p61_p7 = pnand %p60_p6, %p54_p3 }
   0xf   :  { %64 = shalt.err (!%p61_p7)
}
  0x10   :  { %17 = dma.hbm_to_vmem [thread:$0]  %s128_s0, 128, %s15_s7, [#allocation3]  }
  0x11   :  { %87 = dma.done.wait [#allocation3], 128  }
  0x12   :  { %88 = vsyncadd [#allocation3], 4294967168  ;;  %v21_v0 = vld [vmem:[#allocation2] sm:$0xff]  ;;  %s92_s18 = smov 1   ;;  %s93_s19 = smov [#allocation5]  }
  0x13   :  { %22 = vrot.lane.b32.xlu0 %v21_v0, %s92_s18  ;;  %s31_s20 = sshll.u32 %s93_s19, 4  ;;  %s32_s20 = int_to_ptr.vmem [resolvable:$true] %s31_s20 }
  0x14   :  { %s65_s21 = scalar_lea.vmem %s32_s20, 128  ;;  %p70_p9 = scmp.lt.s32.totalorder %s32_s20, %s32_s20 }
  0x15   :  { %p66_p8 = scmp.ne.s32.totalorder %s32_s20, %s65_s21  ;;  %p71_p10 = scmp.lt.s32.totalorder %s65_s21, %s65_s21 }
  0x17   :  { %p72_p11 = por %p71_p10, %p70_p9 }
  0x19   :  { %p73_p12 = pnand %p72_p11, %p66_p8 }
  0x85   :  { %v23_v1 = vpop.permute.xlu0 %22 }
  0x86   :  { %24 = vst [vmem:[#allocation5] sm:$0xff] %v23_v1 }
  0x87   :  { %76 = shalt.err (!%p73_p12)
}
  0x88   :  { %s77_s0 = scalar_lea.hbm %s129_s1, 128 }
  0x89   :  { %p78_p13 = scmp.ne.s32.totalorder %s129_s1, %s77_s0  ;;  %p81_p0 = scmp.lt.u32.totalorder %s77_s0, %s129_s1 }
  0x8b   :  { %p83_p1 = pnand %p81_p0, %p78_p13 }
  0x8d   :  { %86 = shalt.err (!%p83_p1)
}
  0x8e   :  { %34 = dma.vmem_to_hbm [thread:$0]  %s32_s20, 128, %s129_s1, [#allocation4]  }
  0x8f   :  { %89 = dma.done.wait [#allocation4], 128  }
  0x90   :  { %90 = vsyncadd [#allocation4], 4294967168 }
  0x91   :  { %38 = vsyncpa [#allocation3], 1 }
  0x92   :  { %39 = vsyncpa [#allocation4], 1 }

</bundles_post_ra>
